<compile_context>
chip_gen: v5e
topology: v5e:2x2
jax: 0.10.0
libtpu: 0.0.40
codegen_flags: <defaults>
</compile_context>

<pallas_src>
import jax
import jax.numpy as jnp
from jax.experimental import pallas as pl
from jax.experimental.pallas import tpu as pltpu

F_PAD = 128      # padded feature width (real width = 100)
EPS = 1e-5       # PyTorch BatchNorm1d default

# slab row layout (f32, (9, 128)):
#   0: w0 row (Linear(1,100) weight, lanes 0..99)
#   1: w3 row (Linear(100,1) weight, lanes 0..99)
#   2..4: gamma for BN0 / BN1 / BN2
#   5..7: beta  for BN0 / BN1 / BN2
#   8: b3 at lane 0


def kernel(t_ref, w12_ref, slab_ref, o_ref):
    """Whole forward pass on one VMEM-resident tile.

    t_ref    : (B, 1)   f32    raw scalar input
    w12_ref  : (2, 128, 128)   layer-1/2 weights, stored (in, out), padded,
                               already in the MXU dtype (f32 or bf16)
    slab_ref : (9, 128) f32    packed small params (see layout above)
    o_ref    : (B, 1)   f32    output
    """
    t = t_ref[...]                                           # (B, 1) f32

    # ---- layer 0: Linear(1,100) + BN + ReLU, collapsed to scalar stats ----
    # column j of (t @ w0 + b0) has batch mean w0_j*mean_t + b0_j and biased
    # variance w0_j^2*var_t, so BN reduces to a per-lane rescale of (t - mean_t).
    mean_t = jnp.mean(t, axis=0, keepdims=True)              # (1, 1)
    var_t = jnp.mean((t - mean_t) * (t - mean_t),
                     axis=0, keepdims=True)                  # (1, 1) biased
    w0 = slab_ref[0:1, :]                                    # (1, 128)
    g0 = slab_ref[2:3, :]
    beta0 = slab_ref[5:6, :]
    scale0 = g0 * w0 * jax.lax.rsqrt(w0 * w0 * var_t + EPS)  # (1, 128)
    h = jnp.maximum((t - mean_t) * scale0 + beta0, 0.0)      # (B, 128)

    # ---- layers 1, 2: 128x128 MXU matmul + folded BN affine + ReLU ----
    # Linear biases dropped (cancelled by training-mode BN); weights arrive
    # pre-cast, only the activations are cast (no-op on the f32 path).
    for i in range(2):
        h = jnp.dot(h.astype(w12_ref.dtype), w12_ref[i],
                    preferred_element_type=jnp.float32)      # (B, 128) f32
        mean = jnp.mean(h, axis=0, keepdims=True)            # (1, 128)
        msq = jnp.mean(h * h, axis=0, keepdims=True)
        var = jnp.maximum(msq - mean * mean, 0.0)            # biased, one-pass
        gamma = slab_ref[3 + i:4 + i, :]
        beta = slab_ref[6 + i:7 + i, :]
        scale = gamma * jax.lax.rsqrt(var + EPS)
        bias = beta - mean * scale
        h = jnp.maximum(h * scale + bias, 0.0)

    # ---- layer 3: Linear(100,1) as VPU multiply + lane reduction ----
    w3 = slab_ref[1:2, :]                                    # (1, 128)
    b3 = slab_ref[8:9, 0:1]                                  # (1, 1)
    o_ref[...] = jnp.sum(h * w3, axis=-1, keepdims=True) + b3


def simple_forward(x, t, params, *, matmul_dtype=jnp.bfloat16):
    """JAX wrapper reproducing Simple.forward(x, t).  `x` is unused."""
    del x
    B = t.shape[0]

    # pre-cast interior weights in the wrapper (DMA halves when bf16)
    w12 = params["w12"].astype(matmul_dtype)
    slab = params["slab"]

    # VMEM budget: weights + slab + a handful of live (B,128) f32 slabs
    # (t / o pad to 128 lanes too).  Floor at 32 MiB so small-B behaviour
    # matches the default; cap at physical VMEM of v5e/v6e.
    itemsize = jnp.dtype(matmul_dtype).itemsize
    needed = (2 * F_PAD * F_PAD * itemsize      # w12
              + 16 * F_PAD * 4                  # slab (sublane-padded)
              + 8 * B * F_PAD * 4)              # t, o, ~6 live activation slabs
    vmem_limit = int(min(max(2 * needed + (4 << 20), 32 << 20), 128 << 20))

    vmem = pl.BlockSpec(memory_space=pltpu.MemorySpace.VMEM)

    return pl.pallas_call(
        kernel,
        out_shape=jax.ShapeDtypeStruct((B, 1), jnp.float32),
        in_specs=[vmem, vmem, vmem],
        out_specs=vmem,
        compiler_params=pltpu.CompilerParams(vmem_limit_bytes=vmem_limit),
    )(t.astype(jnp.float32), w12, slab)


def init_params(key):
    """Deterministic init matching the PyTorch module's layer shapes."""
    keys = jax.random.split(key, 8)

    def linear(kw, kb, din, dout):
        bound = din ** -0.5
        w = jax.random.uniform(kw, (din, dout), jnp.float32, -bound, bound)
        b = jax.random.uniform(kb, (dout,), jnp.float32, -bound, bound)
        return w, b

    w0, b0 = linear(keys[0], keys[1], 1, 100)
    w1, b1 = linear(keys[2], keys[3], 100, 100)
    w2, b2 = linear(keys[4], keys[5], 100, 100)
    w3, b3 = linear(keys[6], keys[7], 100, 1)

    F = F_PAD
    # weights/biases are zero-padded to 128 lanes; padded lanes stay 0
    # through every layer so they never contaminate real outputs.
    w12 = (jnp.zeros((2, F, F), jnp.float32)
           .at[0, :100, :100].set(w1)
           .at[1, :100, :100].set(w2))

    slab = jnp.zeros((9, F), jnp.float32)
    slab = slab.at[0, :100].set(w0[0])          # w0 row
    slab = slab.at[1, :100].set(w3[:, 0])       # w3 row
    slab = slab.at[2:5, :100].set(1.0)          # BN gamma init = 1 (real lanes)
    # rows 5..7 (beta) stay 0 (BN default init)
    slab = slab.at[8, 0].set(b3[0])             # final bias

    params = {
        # packed kernel operands
        "w12": w12,
        "slab": slab,
        # raw padded pieces, used only by the pure-JAX reference
        "w0":  jnp.zeros((1, F), jnp.float32).at[0, :100].set(w0[0]),
        "b0":  jnp.zeros((1, F), jnp.float32).at[0, :100].set(b0),
        "b12": (jnp.zeros((2, 1, F), jnp.float32)
                .at[0, 0, :100].set(b1)
                .at[1, 0, :100].set(b2)),
        "w3":  jnp.zeros((1, F), jnp.float32).at[0, :100].set(w3[:, 0]),
        "b3":  jnp.reshape(b3, (1, 1)),
        "gamma": jnp.zeros((3, 1, F), jnp.float32).at[:, :, :100].set(1.0),
        "beta":  jnp.zeros((3, 1, F), jnp.float32),
    }
    return params


def _reference(t, params, matmul_dtype=jnp.float32):
    """Pure-JAX reference using the literal PyTorch formulation
    (with Linear biases and two-pass BN variance)."""
    def bn_relu(h, i):
        mean = jnp.mean(h, axis=0, keepdims=True)
        var = jnp.mean((h - mean) ** 2, axis=0, keepdims=True)  # biased
        h = (h - mean) / jnp.sqrt(var + EPS)
        return jnp.maximum(h * params["gamma"][i] + params["beta"][i], 0.0)

    h = t * params["w0"] + params["b0"]
    h = bn_relu(h, 0)
    for i in range(2):
        h = jnp.dot(h.astype(matmul_dtype),
                    params["w12"][i].astype(matmul_dtype),
                    preferred_element_type=jnp.float32) + params["b12"][i]
        h = bn_relu(h, i + 1)
    return jnp.sum(h * params["w3"], axis=-1, keepdims=True) + params["b3"]


if __name__ == "__main__":
    key = jax.random.PRNGKey(0)
    k_param, k_x, k_t = jax.random.split(key, 3)

    params = init_params(k_param)

    B, x_dim = 8, 4
    x = jax.random.normal(k_x, (B, x_dim), jnp.float32)     # unused by forward
    t = jax.random.normal(k_t, (B, 1), jnp.float32) * 5.0

    # f32 MXU path: exact-semantics check vs. the literal formulation
    ref_f32 = _reference(t, params)
    out_f32 = jax.block_until_ready(
        simple_forward(x, t, params, matmul_dtype=jnp.float32))
    assert out_f32.shape == (B, 1)
    assert jnp.allclose(out_f32, ref_f32, atol=1e-4, rtol=1e-4), "f32 mismatch"

    # bf16 MXU operands (default / production path); compare against a matching
    # bf16 reference with a modest tolerance for the algebraic rewrites.
    out_bf16 = jax.block_until_ready(
        simple_forward(x, t, params, matmul_dtype=jnp.bfloat16))
    ref_bf16 = _reference(t, params, matmul_dtype=jnp.bfloat16)
    assert jnp.allclose(out_bf16, ref_bf16, atol=5e-3, rtol=5e-3), "bf16 mismatch"

    print("KERNEL_OK")
</pallas_src>

<mosaic_0001>
module attributes {stable_mosaic.version = 11 : i64} {
  func.func @kernel(%arg0: memref<8x1xf32, #tpu.memory_space<vmem>>, %arg1: memref<2x128x128xf32, #tpu.memory_space<vmem>>, %arg2: memref<9x128xf32, #tpu.memory_space<vmem>>, %arg3: memref<8x1xf32, #tpu.memory_space<vmem>>) attributes {dimension_semantics = [], scalar_prefetch = 0 : i64, scratch_operands = 0 : i64, tpu.core_type = #tpu.core_type<tc>} {
    %c0 = arith.constant 0 : index
    %c0_0 = arith.constant 0 : index
    %0 = vector.load %arg0[%c0, %c0_0] : memref<8x1xf32, #tpu.memory_space<vmem>>, vector<8x1xf32>
    %cst = arith.constant dense<0.000000e+00> : vector<1xf32>
    %1 = vector.multi_reduction <add>, %0, %cst [0] : vector<8x1xf32> to vector<1xf32>
    %2 = vector.shape_cast %1 : vector<1xf32> to vector<1x1xf32>
    %cst_1 = arith.constant 8.000000e+00 : f32
    %3 = vector.broadcast %cst_1 : f32 to vector<1x1xf32>
    %4 = arith.divf %2, %3 : vector<1x1xf32>
    %5 = vector.broadcast %4 : vector<1x1xf32> to vector<8x1xf32>
    %6 = arith.subf %0, %5 : vector<8x1xf32>
    %7 = vector.broadcast %4 : vector<1x1xf32> to vector<8x1xf32>
    %8 = arith.subf %0, %7 : vector<8x1xf32>
    %9 = arith.mulf %6, %8 : vector<8x1xf32>
    %cst_2 = arith.constant dense<0.000000e+00> : vector<1xf32>
    %10 = vector.multi_reduction <add>, %9, %cst_2 [0] : vector<8x1xf32> to vector<1xf32>
    %11 = vector.shape_cast %10 : vector<1xf32> to vector<1x1xf32>
    %cst_3 = arith.constant 8.000000e+00 : f32
    %12 = vector.broadcast %cst_3 : f32 to vector<1x1xf32>
    %13 = arith.divf %11, %12 : vector<1x1xf32>
    %c0_4 = arith.constant 0 : index
    %c0_5 = arith.constant 0 : index
    %14 = vector.load %arg2[%c0_4, %c0_5] : memref<9x128xf32, #tpu.memory_space<vmem>>, vector<1x128xf32>
    %c2 = arith.constant 2 : index
    %c0_6 = arith.constant 0 : index
    %15 = vector.load %arg2[%c2, %c0_6] : memref<9x128xf32, #tpu.memory_space<vmem>>, vector<1x128xf32>
    %c5 = arith.constant 5 : index
    %c0_7 = arith.constant 0 : index
    %16 = vector.load %arg2[%c5, %c0_7] : memref<9x128xf32, #tpu.memory_space<vmem>>, vector<1x128xf32>
    %17 = arith.mulf %15, %14 : vector<1x128xf32>
    %18 = arith.mulf %14, %14 : vector<1x128xf32>
    %19 = vector.broadcast %13 : vector<1x1xf32> to vector<1x128xf32>
    %20 = arith.mulf %18, %19 : vector<1x128xf32>
    %cst_8 = arith.constant 9.99999974E-6 : f32
    %21 = vector.broadcast %cst_8 : f32 to vector<1x128xf32>
    %22 = arith.addf %20, %21 : vector<1x128xf32>
    %23 = math.rsqrt %22 : vector<1x128xf32>
    %24 = arith.mulf %17, %23 : vector<1x128xf32>
    %25 = vector.broadcast %4 : vector<1x1xf32> to vector<8x1xf32>
    %26 = arith.subf %0, %25 : vector<8x1xf32>
    %27 = vector.broadcast %26 : vector<8x1xf32> to vector<8x128xf32>
    %28 = vector.broadcast %24 : vector<1x128xf32> to vector<8x128xf32>
    %29 = arith.mulf %27, %28 : vector<8x128xf32>
    %30 = vector.broadcast %16 : vector<1x128xf32> to vector<8x128xf32>
    %31 = arith.addf %29, %30 : vector<8x128xf32>
    %cst_9 = arith.constant 0.000000e+00 : f32
    %32 = vector.broadcast %cst_9 : f32 to vector<8x128xf32>
    %33 = arith.maximumf %31, %32 : vector<8x128xf32>
    %c0_10 = arith.constant 0 : index
    %c0_11 = arith.constant 0 : index
    %c0_12 = arith.constant 0 : index
    %34 = vector.load %arg1[%c0_10, %c0_11, %c0_12] : memref<2x128x128xf32, #tpu.memory_space<vmem>>, vector<1x128x128xf32>
    %35 = vector.shape_cast %34 : vector<1x128x128xf32> to vector<128x128xf32>
    %cst_13 = arith.constant dense<0.000000e+00> : vector<8x128xf32>
    %36 = tpu.matmul %33, %35, %cst_13 {dimension_numbers = #tpu.dot_dimension_numbers<[1], [0], [0], [1], [0, 0, 1, 1], [], []>} : vector<8x128xf32>, vector<128x128xf32>, vector<8x128xf32> -> vector<8x128xf32>
    %cst_14 = arith.constant dense<0.000000e+00> : vector<128xf32>
    %37 = vector.multi_reduction <add>, %36, %cst_14 [0] : vector<8x128xf32> to vector<128xf32>
    %38 = vector.shape_cast %37 : vector<128xf32> to vector<1x128xf32>
    %cst_15 = arith.constant 8.000000e+00 : f32
    %39 = vector.broadcast %cst_15 : f32 to vector<1x128xf32>
    %40 = arith.divf %38, %39 : vector<1x128xf32>
    %41 = arith.mulf %36, %36 : vector<8x128xf32>
    %cst_16 = arith.constant dense<0.000000e+00> : vector<128xf32>
    %42 = vector.multi_reduction <add>, %41, %cst_16 [0] : vector<8x128xf32> to vector<128xf32>
    %43 = vector.shape_cast %42 : vector<128xf32> to vector<1x128xf32>
    %cst_17 = arith.constant 8.000000e+00 : f32
    %44 = vector.broadcast %cst_17 : f32 to vector<1x128xf32>
    %45 = arith.divf %43, %44 : vector<1x128xf32>
    %46 = arith.mulf %40, %40 : vector<1x128xf32>
    %47 = arith.subf %45, %46 : vector<1x128xf32>
    %cst_18 = arith.constant 0.000000e+00 : f32
    %48 = vector.broadcast %cst_18 : f32 to vector<1x128xf32>
    %49 = arith.maximumf %47, %48 : vector<1x128xf32>
    %c3 = arith.constant 3 : index
    %c0_19 = arith.constant 0 : index
    %50 = vector.load %arg2[%c3, %c0_19] : memref<9x128xf32, #tpu.memory_space<vmem>>, vector<1x128xf32>
    %c6 = arith.constant 6 : index
    %c0_20 = arith.constant 0 : index
    %51 = vector.load %arg2[%c6, %c0_20] : memref<9x128xf32, #tpu.memory_space<vmem>>, vector<1x128xf32>
    %cst_21 = arith.constant 9.99999974E-6 : f32
    %52 = vector.broadcast %cst_21 : f32 to vector<1x128xf32>
    %53 = arith.addf %49, %52 : vector<1x128xf32>
    %54 = math.rsqrt %53 : vector<1x128xf32>
    %55 = arith.mulf %50, %54 : vector<1x128xf32>
    %56 = arith.mulf %40, %55 : vector<1x128xf32>
    %57 = arith.subf %51, %56 : vector<1x128xf32>
    %58 = vector.broadcast %55 : vector<1x128xf32> to vector<8x128xf32>
    %59 = arith.mulf %36, %58 : vector<8x128xf32>
    %60 = vector.broadcast %57 : vector<1x128xf32> to vector<8x128xf32>
    %61 = arith.addf %59, %60 : vector<8x128xf32>
    %cst_22 = arith.constant 0.000000e+00 : f32
    %62 = vector.broadcast %cst_22 : f32 to vector<8x128xf32>
    %63 = arith.maximumf %61, %62 : vector<8x128xf32>
    %c1 = arith.constant 1 : index
    %c0_23 = arith.constant 0 : index
    %c0_24 = arith.constant 0 : index
    %64 = vector.load %arg1[%c1, %c0_23, %c0_24] : memref<2x128x128xf32, #tpu.memory_space<vmem>>, vector<1x128x128xf32>
    %65 = vector.shape_cast %64 : vector<1x128x128xf32> to vector<128x128xf32>
    %cst_25 = arith.constant dense<0.000000e+00> : vector<8x128xf32>
    %66 = tpu.matmul %63, %65, %cst_25 {dimension_numbers = #tpu.dot_dimension_numbers<[1], [0], [0], [1], [0, 0, 1, 1], [], []>} : vector<8x128xf32>, vector<128x128xf32>, vector<8x128xf32> -> vector<8x128xf32>
    %cst_26 = arith.constant dense<0.000000e+00> : vector<128xf32>
    %67 = vector.multi_reduction <add>, %66, %cst_26 [0] : vector<8x128xf32> to vector<128xf32>
    %68 = vector.shape_cast %67 : vector<128xf32> to vector<1x128xf32>
    %cst_27 = arith.constant 8.000000e+00 : f32
    %69 = vector.broadcast %cst_27 : f32 to vector<1x128xf32>
    %70 = arith.divf %68, %69 : vector<1x128xf32>
    %71 = arith.mulf %66, %66 : vector<8x128xf32>
    %cst_28 = arith.constant dense<0.000000e+00> : vector<128xf32>
    %72 = vector.multi_reduction <add>, %71, %cst_28 [0] : vector<8x128xf32> to vector<128xf32>
    %73 = vector.shape_cast %72 : vector<128xf32> to vector<1x128xf32>
    %cst_29 = arith.constant 8.000000e+00 : f32
    %74 = vector.broadcast %cst_29 : f32 to vector<1x128xf32>
    %75 = arith.divf %73, %74 : vector<1x128xf32>
    %76 = arith.mulf %70, %70 : vector<1x128xf32>
    %77 = arith.subf %75, %76 : vector<1x128xf32>
    %cst_30 = arith.constant 0.000000e+00 : f32
    %78 = vector.broadcast %cst_30 : f32 to vector<1x128xf32>
    %79 = arith.maximumf %77, %78 : vector<1x128xf32>
    %c4 = arith.constant 4 : index
    %c0_31 = arith.constant 0 : index
    %80 = vector.load %arg2[%c4, %c0_31] : memref<9x128xf32, #tpu.memory_space<vmem>>, vector<1x128xf32>
    %c7 = arith.constant 7 : index
    %c0_32 = arith.constant 0 : index
    %81 = vector.load %arg2[%c7, %c0_32] : memref<9x128xf32, #tpu.memory_space<vmem>>, vector<1x128xf32>
    %cst_33 = arith.constant 9.99999974E-6 : f32
    %82 = vector.broadcast %cst_33 : f32 to vector<1x128xf32>
    %83 = arith.addf %79, %82 : vector<1x128xf32>
    %84 = math.rsqrt %83 : vector<1x128xf32>
    %85 = arith.mulf %80, %84 : vector<1x128xf32>
    %86 = arith.mulf %70, %85 : vector<1x128xf32>
    %87 = arith.subf %81, %86 : vector<1x128xf32>
    %88 = vector.broadcast %85 : vector<1x128xf32> to vector<8x128xf32>
    %89 = arith.mulf %66, %88 : vector<8x128xf32>
    %90 = vector.broadcast %87 : vector<1x128xf32> to vector<8x128xf32>
    %91 = arith.addf %89, %90 : vector<8x128xf32>
    %cst_34 = arith.constant 0.000000e+00 : f32
    %92 = vector.broadcast %cst_34 : f32 to vector<8x128xf32>
    %93 = arith.maximumf %91, %92 : vector<8x128xf32>
    %c1_35 = arith.constant 1 : index
    %c0_36 = arith.constant 0 : index
    %94 = vector.load %arg2[%c1_35, %c0_36] : memref<9x128xf32, #tpu.memory_space<vmem>>, vector<1x128xf32>
    %c8 = arith.constant 8 : index
    %c0_37 = arith.constant 0 : index
    %95 = vector.load %arg2[%c8, %c0_37] : memref<9x128xf32, #tpu.memory_space<vmem>>, vector<1x1xf32>
    %96 = vector.broadcast %94 : vector<1x128xf32> to vector<8x128xf32>
    %97 = arith.mulf %93, %96 : vector<8x128xf32>
    %cst_38 = arith.constant dense<0.000000e+00> : vector<8xf32>
    %98 = vector.multi_reduction <add>, %97, %cst_38 [1] : vector<8x128xf32> to vector<8xf32>
    %99 = vector.shape_cast %98 : vector<8xf32> to vector<8x1xf32>
    %100 = vector.broadcast %95 : vector<1x1xf32> to vector<8x1xf32>
    %101 = arith.addf %99, %100 : vector<8x1xf32>
    %c0_39 = arith.constant 0 : index
    %c0_40 = arith.constant 0 : index
    %102 = vector.load %arg3[%c0_39, %c0_40] : memref<8x1xf32, #tpu.memory_space<vmem>>, vector<8x1xf32>
    tpu.vector_store %arg3[%c0_39, %c0_40], %101 {strides = array<i32>} : memref<8x1xf32, #tpu.memory_space<vmem>>, vector<8x1xf32>,
    return
  }
}

</mosaic_0001>

<bundles_post_ra>
// kernel: tpu_custom_call.1
= control target key start
LH: loop header
LB: loop body
LE: loop exit
PB: predicated region body
PF: predicated region fallthrough
CT: control target
= control target key end

     0   :  { %8 = vsyncpa [#allocation3], 0  ;;  %s391_s0 = inlined_call_operand.vmem [shape: f32[8,1], index: 0, kind: input, shape index: {}]   ;;  %s392_s1 = inlined_call_operand.hbm [shape: f32[2,128,128], index: 1, kind: input, shape index: {}]   ;;  %s393_s2 = inlined_call_operand.hbm [shape: f32[9,128], index: 2, kind: input, shape index: {}]   ;;  %s394_s3 = inlined_call_operand.vmem [shape: f32[8,1], index: 3, kind: output, shape index: {}]  }
   0x1   :  { %s16_s14 = sshll.u32 %s392_s1, 4  ;;  %s17_s14 = int_to_ptr.hbm [resolvable:$true] %s16_s14 }
   0x2   :  { %9 = vsyncpa [#allocation5], 0  ;;  %s342_s15 = smov [#allocation2]   ;;  %s29_s19 = sshll.u32 %s393_s2, 4  ;;  %s30_s19 = int_to_ptr.hbm [resolvable:$true] %s29_s19 }
   0x3   :  { %s18_s16 = sshll.u32 %s342_s15, 4  ;;  %s343_s20 = smov 128   ;;  %s19_s16 = int_to_ptr.vmem [resolvable:$true] %s18_s16 }
   0x4   :  { %s344_s21 = smov 8   ;;  %s345_s22 = smov [#allocation4]  }
   0x5   :  { %24 = dma.hbm_to_vmem [thread:$0]  %s17_s14, 4096, %s19_s16, [#allocation3], %s343_s20, %s343_s20, %s344_s21  }
   0x6   :  { %s31_s23 = sshll.u32 %s345_s22, 4  ;;  %s32_s23 = int_to_ptr.vmem [resolvable:$true] %s31_s23 }
   0x7   :  { %37 = dma.hbm_to_vmem [thread:$0]  %s30_s19, 256, %s32_s23, [#allocation5], %s343_s20, %s343_s20, %s344_s21  }
   0x8   :  { %338 = dma.done.wait [#allocation3], 4096  }
   0x9   :  { %339 = vsyncadd [#allocation3], 4294963200 }
   0xa   :  { %340 = dma.done.wait [#allocation5], 256  }
   0xb   :  { %341 = vsyncadd [#allocation5], 4294967040  ;;  %v346_v0 = vmov 0   ;;  %v347_v1 = vmov 8.0   ;;  %vm47_vm0 = vcmask 7168   ;;  %v46_v3 = vld [vmem:[%s391_s0] sm:$0xff] }
   0xc   :  { %278 = vset.pattern.permute.xlu0 %v346_v0  ;;  %282 = vrcp.f32 %v347_v1  ;;  %v48_v4 = vsel %vm47_vm0, %v46_v3, 0.0  ;;  %v121_v27 = vld [vmem:[#allocation2 + $0x78] sm:$0xff]  ;;  %v120_v28 = vld [vmem:[#allocation2 + $0x70] sm:$0xff]  ;;  %v119_v29 = vld [vmem:[#allocation2 + $0x68] sm:$0xff] }
   0xd   :  { %v49_v6 = vrot.slane %v48_v4, 4  ;;  %122 = vmatpush.msra.mxu0 %v121_v27  ;;  %v118_v30 = vld [vmem:[#allocation2 + $0x60] sm:$0xff]  ;;  %v117_v31 = vld [vmem:[#allocation2 + $0x58] sm:$0xff]  ;;  %v116_v32 = vld [vmem:[#allocation2 + $0x50] sm:$0xff] }
   0xe   :  { %v115_v33 = vld [vmem:[#allocation2 + $0x48] sm:$0xff]  ;;  %v114_v34 = vld [vmem:[#allocation2 + $0x40] sm:$0xff]  ;;  %v113_v35 = vld [vmem:[#allocation2 + $0x38] sm:$0xff] }
   0xf   :  { %v50_v8 = vadd.f32 %v49_v6, %v48_v4  ;;  %123 = vmatpush.msra.mxu0 %v120_v28  ;;  %v112_v36 = vld [vmem:[#allocation2 + $0x30] sm:$0xff]  ;;  %v111_v37 = vld [vmem:[#allocation2 + $0x28] sm:$0xff]  ;;  %v110_v38 = vld [vmem:[#allocation2 + $0x20] sm:$0xff] }
  0x10   :  { %v109_v39 = vld [vmem:[#allocation2 + $0x18] sm:$0xff]  ;;  %v73_v40 = vld [vmem:[#allocation4] sm:$0x1]  ;;  %v108_v41 = vld [vmem:[#allocation2 + $0x10] sm:$0xff] }
  0x11   :  { %v51_v10 = vrot.slane %v50_v8, 2  ;;  %124 = vmatpush.msra.mxu0 %v119_v29  ;;  %v107_v42 = vld [vmem:[#allocation2 + $0x8] sm:$0xff]  ;;  %v77_v43 = vmul.f32 %v73_v40, %v73_v40  ;;  %v106_v44 = vld [vmem:[#allocation2] sm:$0xff]  ;;  %v197_v0 = vld [vmem:[#allocation2 + $0xf8] sm:$0xff] }
  0x12   :  { %v283_v2 = vpop.eup %282  ;;  %v74_v51 = vld [vmem:[#allocation4 + $0x2] sm:$0x1]  ;;  %v279_v59 = vld [vmem:[#allocation4 + $0x5] ss:$0 sm:$0xff]  ;;  %198 = vmatpush.msra.mxu1 %v197_v0  ;;  %v196_v1 = vld [vmem:[#allocation2 + $0xf0] sm:$0xff] }
  0x13   :  { %v56_v5 = vmul.f32 8.0, %v283_v2  ;;  %v52_v12 = vadd.f32 %v51_v10, %v50_v8  ;;  %vm60_vm1 = vweird.f32 %v283_v2  ;;  %125 = vmatpush.msra.mxu0 %v118_v30  ;;  %v76_v54 = vmul.f32 %v74_v51, %v73_v40  ;;  %v193_v4 = vld [vmem:[#allocation2 + $0xd8] sm:$0xff]  ;;  %v184_v29 = vld [vmem:[#allocation2 + $0x90] sm:$0xff] }
  0x14   :  { %199 = vmatpush.msra.mxu1 %v196_v1  ;;  %v185_v28 = vld [vmem:[#allocation2 + $0x98] sm:$0xff] }
  0x15   :  { %v57_v7 = vsub.f32 1.0, %v56_v5  ;;  %v53_v13 = vrot.slane %v52_v12, 1  ;;  %126 = vmatpush.msra.mxu0 %v117_v31  ;;  %v192_v5 = vld [vmem:[#allocation2 + $0xd0] sm:$0xff] }
  0x17   :  { %v58_v9 = vmul.f32 %v283_v2, %v57_v7  ;;  %v54_v15 = vadd.f32 %v53_v13, %v52_v12  ;;  %127 = vmatpush.msra.mxu0 %v116_v32  ;;  %v190_v12 = vld [vmem:[#allocation2 + $0xc0] sm:$0xff]  ;;  %v183_v32 = vld [vmem:[#allocation2 + $0x88] sm:$0xff] }
  0x19   :  { %v59_v11 = vadd.f32 %v283_v2, %v58_v9  ;;  %128 = vmatpush.msra.mxu0 %v115_v33  ;;  %v191_v9 = vld [vmem:[#allocation2 + $0xc8] sm:$0xff] }
  0x1b   :  { %v378_v14 = vsel %vm60_vm1, %v283_v2, %v59_v11  ;;  %129 = vmatpush.msra.mxu0 %v114_v34  ;;  %v195_v2 = vld [vmem:[#allocation2 + $0xe8] sm:$0xff]  ;;  %v182_v34 = vld [vmem:[#allocation2 + $0x80] sm:$0xff] }
  0x1c   :  { %v62_v16 = vmul.f32 %v378_v14, %v54_v15  ;;  %200 = vmatpush.msra.mxu1 %v195_v2 }
  0x1d   :  { %130 = vmatpush.msra.mxu0 %v113_v35 }
  0x1e   :  { %v63_v17 = vsub.f32 %v46_v3, %v62_v16  ;;  %v194_v3 = vld [vmem:[#allocation2 + $0xe0] sm:$0xff]  ;;  %v189_v16 = vld [vmem:[#allocation2 + $0xb8] sm:$0xff] }
  0x1f   :  { %131 = vmatpush.msra.mxu0 %v112_v36  ;;  %201 = vmatpush.msra.mxu1 %v194_v3 }
  0x20   :  { %v64_v18 = vmul.f32 %v63_v17, %v63_v17 }
  0x21   :  { %132 = vmatpush.msra.mxu0 %v111_v37  ;;  %202 = vmatpush.msra.mxu1 %v193_v4 }
  0x22   :  { %v65_v19 = vsel %vm47_vm0, %v64_v18, 0.0 }
  0x23   :  { %v66_v20 = vrot.slane %v65_v19, 4  ;;  %133 = vmatpush.msra.mxu0 %v110_v38  ;;  %203 = vmatpush.msra.mxu1 %v192_v5 }
  0x25   :  { %v67_v21 = vadd.f32 %v66_v20, %v65_v19  ;;  %134 = vmatpush.msra.mxu0 %v109_v39  ;;  %204 = vmatpush.msra.mxu1 %v191_v9  ;;  %v188_v19 = vld [vmem:[#allocation2 + $0xb0] sm:$0xff] }
  0x27   :  { %v68_v22 = vrot.slane %v67_v21, 2  ;;  %135 = vmatpush.msra.mxu0 %v108_v41  ;;  %205 = vmatpush.msra.mxu1 %v190_v12 }
  0x29   :  { %v69_v23 = vadd.f32 %v68_v22, %v67_v21  ;;  %136 = vmatpush.msra.mxu0 %v107_v42  ;;  %206 = vmatpush.msra.mxu1 %v189_v16  ;;  %v187_v22 = vld [vmem:[#allocation2 + $0xa8] sm:$0xff]  ;;  %v160_v42 = vld [vmem:[#allocation4 + $0x3] sm:$0x1]  ;;  %v236_v16 = vld [vmem:[#allocation4 + $0x4] sm:$0x1] }
  0x2b   :  { %v70_v24 = vrot.slane %v69_v23, 1  ;;  %137 = vmatpush.msra.mxu0 %v106_v44  ;;  %207 = vmatpush.msra.mxu1 %v188_v19 }
  0x2d   :  { %v71_v25 = vadd.f32 %v70_v24, %v69_v23  ;;  %208 = vmatpush.msra.mxu1 %v187_v22 }
  0x2f   :  { %v72_v26 = vmul.f32 %v71_v25, %v378_v14  ;;  %v186_v25 = vld [vmem:[#allocation2 + $0xa0] sm:$0xff] }
  0x30   :  { %209 = vmatpush.msra.mxu1 %v186_v25 }
  0x31   :  { %80 = vperm.xlu0 %278, %v72_v26  }
  0x32   :  { %210 = vmatpush.msra.mxu1 %v185_v28 }
  0x34   :  { %211 = vmatpush.msra.mxu1 %v184_v29  ;;  %v281_v29 = vld [vmem:[#allocation4 + $0x8] ss:$0 sm:$0xff] }
  0x36   :  { %212 = vmatpush.msra.mxu1 %v183_v32 }
  0x38   :  { %213 = vmatpush.msra.mxu1 %v182_v34 }
  0x39   :  { %98 = vperm.xlu0 %278, %v63_v17  }
  0xa3   :  { %v81_v45 = vpop.permute.xlu0 %80 }
  0xa4   :  { %v83_v46 = vmul.f32 %v81_v45, %v77_v43 }
  0xa6   :  { %v84_v47 = vadd.f32 1e-05, %v83_v46  ;;  %v161_v46 = vld [vmem:[#allocation4 + $0x6] sm:$0x1] }
  0xa8   :  { %284 = vrsqrt.f32 %v84_v47  ;;  %vm91_vm3 = vweird.f32 %v84_v47 }
  0xab   :  { %v99_v60 = vpop.permute.xlu0 %98 }
  0xae   :  { %v285_v48 = vpop.eup %284 }
  0xaf   :  { %v86_v49 = vmul.f32 %v285_v48, %v84_v47  ;;  %vm92_vm2 = vweird.f32 %v285_v48 }
  0xb0   :  { %vm93_vm4 = vmor %vm91_vm3, %vm92_vm2 }
  0xb1   :  { %v87_v50 = vmul.f32 %v285_v48, %v86_v49 }
  0xb3   :  { %v88_v52 = vmul.f32 0.5, %v87_v50 }
  0xb5   :  { %v89_v53 = vsub.f32 1.5, %v88_v52 }
  0xb7   :  { %v90_v55 = vmul.f32 %v285_v48, %v89_v53 }
  0xb9   :  { %v94_v56 = vsel %vm93_vm4, %v285_v48, %v90_v55 }
  0xba   :  { %v95_v57 = vmul.f32 %v94_v56, %v76_v54 }
  0xbc   :  { %v101_v58 = vperm.slane %v95_v57, 0 }
  0xbe   :  { %v102_v61 = vmul.f32 %v101_v58, %v99_v60 }
  0xc0   :  { %v104_v62 = vadd.f32 %v279_v59, %v102_v61 }
  0xc2   :  { %v105_v63 = vmax.f32 %v104_v62, 0.0 }
  0xc4   :  { %138 = vmatmul.f32.vlgmr.msra.gmra.mxu0 %v105_v63 }
 0x141   :  { %v139_v6 = vpop.f32.mrf.mxu0 }
 0x142   :  { %v142_v7 = vrot.slane %v139_v6, 4  ;;  %v149_v8 = vmul.f32 %v139_v6, %v139_v6 }
 0x144   :  { %v143_v10 = vadd.f32 %v142_v7, %v139_v6  ;;  %v150_v11 = vrot.slane %v149_v8, 4 }
 0x146   :  { %v144_v13 = vrot.slane %v143_v10, 2  ;;  %v151_v15 = vadd.f32 %v150_v11, %v149_v8 }
 0x148   :  { %v145_v17 = vadd.f32 %v144_v13, %v143_v10  ;;  %v152_v18 = vrot.slane %v151_v15, 2 }
 0x14a   :  { %v146_v20 = vrot.slane %v145_v17, 1  ;;  %v153_v21 = vadd.f32 %v152_v18, %v151_v15 }
 0x14c   :  { %v147_v23 = vadd.f32 %v146_v20, %v145_v17  ;;  %v154_v24 = vrot.slane %v153_v21, 1  ;;  %v237_v20 = vld [vmem:[#allocation4 + $0x7] sm:$0x1] }
 0x14e   :  { %v148_v26 = vmul.f32 %v147_v23, %v378_v14  ;;  %v155_v27 = vadd.f32 %v154_v24, %v153_v21 }
 0x150   :  { %v156_v30 = vmul.f32 %v155_v27, %v378_v14  ;;  %v157_v31 = vmul.f32 %v148_v26, %v148_v26 }
 0x152   :  { %v158_v33 = vsub.f32 %v156_v30, %v157_v31 }
 0x154   :  { %v159_v35 = vmax.f32 %v158_v33, 0.0 }
 0x156   :  { %v162_v36 = vadd.f32 1e-05, %v159_v35 }
 0x158   :  { %286 = vrsqrt.f32 %v162_v36  ;;  %vm169_vm6 = vweird.f32 %v162_v36 }
 0x15e   :  { %v287_v37 = vpop.eup %286 }
 0x15f   :  { %v164_v38 = vmul.f32 %v287_v37, %v162_v36  ;;  %vm170_vm5 = vweird.f32 %v287_v37 }
 0x160   :  { %vm171_vm7 = vmor %vm169_vm6, %vm170_vm5 }
 0x161   :  { %v165_v39 = vmul.f32 %v287_v37, %v164_v38 }
 0x163   :  { %v166_v40 = vmul.f32 0.5, %v165_v39 }
 0x165   :  { %v167_v41 = vsub.f32 1.5, %v166_v40 }
 0x167   :  { %v168_v43 = vmul.f32 %v287_v37, %v167_v41 }
 0x169   :  { %v172_v44 = vsel %vm171_vm7, %v287_v37, %v168_v43 }
 0x16a   :  { %v173_v45 = vmul.f32 %v172_v44, %v160_v42 }
 0x16c   :  { %v176_v47 = vperm.slane %v173_v45, 0  ;;  %v174_v48 = vmul.f32 %v173_v45, %v148_v26  ;;  %v280_v26 = vld [vmem:[#allocation4 + $0x1] ss:$0 sm:$0xff] }
 0x16e   :  { %v175_v49 = vsub.f32 %v161_v46, %v174_v48  ;;  %v177_v50 = vmul.f32 %v176_v47, %v139_v6 }
 0x170   :  { %v178_v51 = vperm.slane %v175_v49, 0 }
 0x172   :  { %v179_v52 = vadd.f32 %v178_v51, %v177_v50 }
 0x174   :  { %v180_v53 = vmax.f32 %v179_v52, 0.0 }
 0x176   :  { %214 = vmatmul.f32.vlgmr.msra.gmra.mxu1 %v180_v53 }
 0x1f3   :  { %v215_v54 = vpop.f32.mrf.mxu1 }
 0x1f4   :  { %v218_v55 = vrot.slane %v215_v54, 4  ;;  %v225_v56 = vmul.f32 %v215_v54, %v215_v54 }
 0x1f6   :  { %v219_v57 = vadd.f32 %v218_v55, %v215_v54  ;;  %v226_v58 = vrot.slane %v225_v56, 4 }
 0x1f8   :  { %v220_v59 = vrot.slane %v219_v57, 2  ;;  %v227_v60 = vadd.f32 %v226_v58, %v225_v56 }
 0x1fa   :  { %v221_v61 = vadd.f32 %v220_v59, %v219_v57  ;;  %v228_v62 = vrot.slane %v227_v60, 2 }
 0x1fc   :  { %v222_v63 = vrot.slane %v221_v61, 1  ;;  %v229_v0 = vadd.f32 %v228_v62, %v227_v60 }
 0x1fe   :  { %v223_v1 = vadd.f32 %v222_v63, %v221_v61  ;;  %v230_v2 = vrot.slane %v229_v0, 1 }
 0x200   :  { %v224_v3 = vmul.f32 %v223_v1, %v378_v14  ;;  %v231_v4 = vadd.f32 %v230_v2, %v229_v0 }
 0x202   :  { %v232_v5 = vmul.f32 %v231_v4, %v378_v14  ;;  %v233_v6 = vmul.f32 %v224_v3, %v224_v3 }
 0x204   :  { %v234_v7 = vsub.f32 %v232_v5, %v233_v6 }
 0x206   :  { %v235_v8 = vmax.f32 %v234_v7, 0.0 }
 0x208   :  { %v238_v9 = vadd.f32 1e-05, %v235_v8 }
 0x20a   :  { %288 = vrsqrt.f32 %v238_v9  ;;  %vm245_vm9 = vweird.f32 %v238_v9 }
 0x210   :  { %v289_v10 = vpop.eup %288 }
 0x211   :  { %v240_v11 = vmul.f32 %v289_v10, %v238_v9  ;;  %vm246_vm8 = vweird.f32 %v289_v10 }
 0x212   :  { %vm247_vm10 = vmor %vm245_vm9, %vm246_vm8 }
 0x213   :  { %v241_v12 = vmul.f32 %v289_v10, %v240_v11 }
 0x215   :  { %v242_v13 = vmul.f32 0.5, %v241_v12 }
 0x217   :  { %v243_v15 = vsub.f32 1.5, %v242_v13 }
 0x219   :  { %v244_v17 = vmul.f32 %v289_v10, %v243_v15 }
 0x21b   :  { %v248_v18 = vsel %vm247_vm10, %v289_v10, %v244_v17 }
 0x21c   :  { %v249_v19 = vmul.f32 %v248_v18, %v236_v16 }
 0x21e   :  { %v252_v21 = vperm.slane %v249_v19, 0  ;;  %v250_v14 = vmul.f32 %v249_v19, %v224_v3 }
 0x220   :  { %v251_v22 = vsub.f32 %v237_v20, %v250_v14  ;;  %v253_v23 = vmul.f32 %v252_v21, %v215_v54 }
 0x222   :  { %v254_v24 = vperm.slane %v251_v22, 0 }
 0x224   :  { %v255_v25 = vadd.f32 %v254_v24, %v253_v23 }
 0x226   :  { %v256_v27 = vmax.f32 %v255_v25, 0.0 }
 0x228   :  { %v260_v28 = vmul.f32 %v280_v26, %v256_v27 }
 0x22a   :  { %261 = vadd.xlane.f32.xlu1 %v260_v28 }
 0x29d   :  { %v262_v30 = vpop.xlane.xlu1 %261 }
 0x29e   :  { %v264_v31 = vadd.f32 %v281_v29, %v262_v30 }
 0x2a0   :  { %265 = vst.msk [vmem:[%s394_s3] sm:$0xff] %vm47_vm0, %v264_v31 }
 0x2a1   :  { %270 = vsyncpa [#allocation3], 1 }
 0x2a2   :  { %271 = vsyncpa [#allocation5], 1 }

</bundles_post_ra>
